<compile_context>
chip_gen: v7x
topology: tpu7x:2x2x1
jax: 0.10.0
libtpu: 0.0.40
codegen_flags: <defaults>
</compile_context>

<pallas_src>
import functools

import jax
import jax.numpy as jnp
from jax.experimental import pallas as pl
from jax.experimental.pallas import tpu as pltpu


def _pima_mlp_kernel(x_ref, p1_ref, p2_ref, p3_ref, o_ref, *, compute_dtype):
    # x tile in (features, batch) orientation: (8, B), lane-dense.
    x = x_ref[...].astype(compute_dtype)

    p1 = p1_ref[...]                               # (12, 9)  = [W1 | b1]
    p2 = p2_ref[...]                               # (8, 13)  = [W2 | b2]
    p3 = p3_ref[...]                               # (9, 1)   = [w3 ; b3]
    w1 = p1[:, 0:8].astype(compute_dtype)          # (12, 8)
    b1 = p1[:, 8:9]                                # (12, 1)  f32
    w2 = p2[:, 0:12].astype(compute_dtype)         # (8, 12)
    b2 = p2[:, 12:13]                              # (8, 1)   f32
    w3 = p3[0:8, :]                                # (8, 1)   f32
    b3 = p3[8:9, :]                                # (1, 1)   f32

    # hidden1 + ReLU (MXU; result dim = batch on the lane axis)
    h1 = jnp.dot(w1, x, preferred_element_type=jnp.float32) + b1       # (12, B)
    h1 = jnp.maximum(h1, 0.0)

    # hidden2 + ReLU (MXU)
    h2 = jnp.dot(w2, h1.astype(compute_dtype),
                 preferred_element_type=jnp.float32) + b2              # (8, B)
    h2 = jnp.maximum(h2, 0.0)

    # Width-1 output head off the MXU: VPU broadcast-multiply + cross-sublane
    # reduce.  No transpose needed in this orientation.
    logits = jnp.sum(w3 * h2, axis=0, keepdims=True) + b3              # (1, B)

    # Numerically-stable sigmoid via tanh (EUP slot, no VALU divide).
    o_ref[...] = 0.5 * jnp.tanh(0.5 * logits) + 0.5


def _round_up(v, m):
    return ((v + m - 1) // m) * m


def pima_classifier_forward(x, params, *, block_b=16384,
                            compute_dtype=jnp.float32):
    """x: (N, 8) float32. params: PyTorch-convention Linear params (out, in)."""
    n = x.shape[0]

    # block_b must be a multiple of 128 (lane-dense output store).  Clamp so
    # that batches larger than one 128-row block always produce >= 2 tiles:
    # on v7x the "parallel" grid axis is what splits work across the 2 TCs.
    block_b = max(128, _round_up(min(block_b, max(128, (n + 1) // 2)), 128))
    n_pad = _round_up(n, block_b)
    num_tiles = n_pad // block_b

    if n_pad != n:
        x = jnp.pad(x, ((0, n_pad - n), (0, 0)))
    # (features, batch) orientation: one XLA-side transpose keeps every
    # in-kernel vreg lane-dense and removes any in-kernel transpose.
    x_t = x.T                                              # (8, n_pad)

    f32 = jnp.float32
    # One packed (weight | bias-column) operand per layer -> 4 DMA slots total.
    p1 = jnp.concatenate(
        [params["w1"].astype(f32), params["b1"].reshape(-1, 1).astype(f32)],
        axis=1)                                            # (12, 9)
    p2 = jnp.concatenate(
        [params["w2"].astype(f32), params["b2"].reshape(-1, 1).astype(f32)],
        axis=1)                                            # (8, 13)
    p3 = jnp.concatenate(
        [params["w3"].T.astype(f32), params["b3"].reshape(1, 1).astype(f32)],
        axis=0)                                            # (9, 1)

    const = lambda i: (0, 0)   # params stay resident in VMEM across the grid

    kernel = functools.partial(_pima_mlp_kernel, compute_dtype=compute_dtype)

    out = pl.pallas_call(
        kernel,
        out_shape=jax.ShapeDtypeStruct((1, n_pad), jnp.float32),
        grid=(num_tiles,),
        in_specs=[
            pl.BlockSpec((8, block_b), lambda i: (0, i)),  # x_t: streamed
            pl.BlockSpec((12, 9), const),                  # [W1 | b1]
            pl.BlockSpec((8, 13), const),                  # [W2 | b2]
            pl.BlockSpec((9, 1), const),                   # [w3 ; b3]
        ],
        out_specs=pl.BlockSpec((1, block_b), lambda i: (0, i)),
        compiler_params=pltpu.CompilerParams(
            dimension_semantics=("parallel",)),
    )(x_t, p1, p2, p3)

    # (1, n_pad) -> (N, 1), dropping padded tail columns.
    return out.reshape(-1)[:n].reshape(n, 1)


def init_params(key):
    """Deterministic synthetic parameters, PyTorch Linear shapes (out, in)."""
    ks = jax.random.split(key, 6)

    def u(k, shape, fan_in):
        bound = 1.0 / jnp.sqrt(fan_in)
        return jax.random.uniform(k, shape, jnp.float32, -bound, bound)

    return {
        "w1": u(ks[0], (12, 8), 8.0),
        "b1": u(ks[1], (12,), 8.0),
        "w2": u(ks[2], (8, 12), 12.0),
        "b2": u(ks[3], (8,), 12.0),
        "w3": u(ks[4], (1, 8), 8.0),
        "b3": u(ks[5], (1,), 8.0),
    }


def _reference(x, params):
    h1 = jnp.maximum(x @ params["w1"].T + params["b1"], 0.0)
    h2 = jnp.maximum(h1 @ params["w2"].T + params["b2"], 0.0)
    return jax.nn.sigmoid(h2 @ params["w3"].T + params["b3"])


if __name__ == "__main__":
    key = jax.random.PRNGKey(0)
    pkey, xkey = jax.random.split(key)

    params = init_params(pkey)
    batch = 200
    x = jax.random.normal(xkey, (batch, 8), dtype=jnp.float32)
    ref = _reference(x, params)

    # fp32 path (exact PyTorch semantics); 200 rows -> block_b=128, 2 tiles.
    out_f32 = pima_classifier_forward(x, params)
    jax.block_until_ready(out_f32)
    assert out_f32.shape == (batch, 1)
    assert jnp.allclose(out_f32, ref, atol=1e-5, rtol=1e-5)

    # bf16 MXU-operand path (f32 accumulation) - faster on v5e/v6e; slight,
    # expected deviation from exact fp32 numerics.
    out_bf16 = pima_classifier_forward(x, params, compute_dtype=jnp.bfloat16)
    jax.block_until_ready(out_bf16)
    assert out_bf16.shape == (batch, 1)
    assert jnp.allclose(out_bf16, ref, atol=2e-2, rtol=2e-2)

    # Larger batch: default block clamps to 512 rows -> 2 lane-dense tiles.
    batch2 = 1000
    x2 = jax.random.normal(jax.random.PRNGKey(7), (batch2, 8), dtype=jnp.float32)
    ref2 = _reference(x2, params)
    out2 = pima_classifier_forward(x2, params)
    jax.block_until_ready(out2)
    assert out2.shape == (batch2, 1)
    assert jnp.allclose(out2, ref2, atol=1e-5, rtol=1e-5)

    print("KERNEL_OK")
</pallas_src>

<mosaic_0001>
module attributes {stable_mosaic.version = 11 : i64} {
  func.func @_pima_mlp_kernel(%arg0: i32, %arg1: memref<8x128xf32, #tpu.memory_space<vmem>>, %arg2: memref<12x9xf32, #tpu.memory_space<vmem>>, %arg3: memref<8x13xf32, #tpu.memory_space<vmem>>, %arg4: memref<9x1xf32, #tpu.memory_space<vmem>>, %arg5: memref<1x128xf32, #tpu.memory_space<vmem>>) attributes {dimension_semantics = [#tpu.dimension_semantics<parallel>], iteration_bounds = array<i64: 2>, scalar_prefetch = 0 : i64, scratch_operands = 0 : i64, tpu.core_type = #tpu.core_type<tc>, window_params = [{transform_indices = @transform_0, window_bounds = array<i64: 8, 128>}, {pipeline_mode = #tpu.pipeline_mode<synchronous>, transform_indices = @transform_1, window_bounds = array<i64: 12, 9>}, {pipeline_mode = #tpu.pipeline_mode<synchronous>, transform_indices = @transform_2, window_bounds = array<i64: 8, 13>}, {pipeline_mode = #tpu.pipeline_mode<synchronous>, transform_indices = @transform_3, window_bounds = array<i64: 9, 1>}, {transform_indices = @transform_4, window_bounds = array<i64: 1, 128>}]} {
    %c0 = arith.constant 0 : index
    %c0_0 = arith.constant 0 : index
    %0 = vector.load %arg1[%c0, %c0_0] : memref<8x128xf32, #tpu.memory_space<vmem>>, vector<8x128xf32>
    %c0_1 = arith.constant 0 : index
    %c0_2 = arith.constant 0 : index
    %1 = vector.load %arg2[%c0_1, %c0_2] : memref<12x9xf32, #tpu.memory_space<vmem>>, vector<12x9xf32>
    %c0_3 = arith.constant 0 : index
    %c0_4 = arith.constant 0 : index
    %2 = vector.load %arg3[%c0_3, %c0_4] : memref<8x13xf32, #tpu.memory_space<vmem>>, vector<8x13xf32>
    %c0_5 = arith.constant 0 : index
    %c0_6 = arith.constant 0 : index
    %3 = vector.load %arg4[%c0_5, %c0_6] : memref<9x1xf32, #tpu.memory_space<vmem>>, vector<9x1xf32>
    %4 = vector.extract_strided_slice %1 {offsets = [0, 0], sizes = [12, 8], strides = [1, 1]} : vector<12x9xf32> to vector<12x8xf32>
    %5 = vector.extract_strided_slice %1 {offsets = [0, 8], sizes = [12, 1], strides = [1, 1]} : vector<12x9xf32> to vector<12x1xf32>
    %6 = vector.extract_strided_slice %2 {offsets = [0, 0], sizes = [8, 12], strides = [1, 1]} : vector<8x13xf32> to vector<8x12xf32>
    %7 = vector.extract_strided_slice %2 {offsets = [0, 12], sizes = [8, 1], strides = [1, 1]} : vector<8x13xf32> to vector<8x1xf32>
    %8 = vector.extract_strided_slice %3 {offsets = [0, 0], sizes = [8, 1], strides = [1, 1]} : vector<9x1xf32> to vector<8x1xf32>
    %9 = vector.extract_strided_slice %3 {offsets = [8, 0], sizes = [1, 1], strides = [1, 1]} : vector<9x1xf32> to vector<1x1xf32>
    %cst = arith.constant dense<0.000000e+00> : vector<12x128xf32>
    %10 = tpu.matmul %4, %0, %cst {dimension_numbers = #tpu.dot_dimension_numbers<[1], [0], [0], [1], [0, 0, 1, 1], [], []>} : vector<12x8xf32>, vector<8x128xf32>, vector<12x128xf32> -> vector<12x128xf32>
    %11 = vector.broadcast %5 : vector<12x1xf32> to vector<12x128xf32>
    %12 = arith.addf %10, %11 : vector<12x128xf32>
    %cst_7 = arith.constant 0.000000e+00 : f32
    %13 = vector.broadcast %cst_7 : f32 to vector<12x128xf32>
    %14 = arith.maximumf %12, %13 : vector<12x128xf32>
    %cst_8 = arith.constant dense<0.000000e+00> : vector<8x128xf32>
    %15 = tpu.matmul %6, %14, %cst_8 {dimension_numbers = #tpu.dot_dimension_numbers<[1], [0], [0], [1], [0, 0, 1, 1], [], []>} : vector<8x12xf32>, vector<12x128xf32>, vector<8x128xf32> -> vector<8x128xf32>
    %16 = vector.broadcast %7 : vector<8x1xf32> to vector<8x128xf32>
    %17 = arith.addf %15, %16 : vector<8x128xf32>
    %cst_9 = arith.constant 0.000000e+00 : f32
    %18 = vector.broadcast %cst_9 : f32 to vector<8x128xf32>
    %19 = arith.maximumf %17, %18 : vector<8x128xf32>
    %20 = vector.broadcast %8 : vector<8x1xf32> to vector<8x128xf32>
    %21 = arith.mulf %20, %19 : vector<8x128xf32>
    %cst_10 = arith.constant dense<0.000000e+00> : vector<128xf32>
    %22 = vector.multi_reduction <add>, %21, %cst_10 [0] : vector<8x128xf32> to vector<128xf32>
    %23 = vector.shape_cast %22 : vector<128xf32> to vector<1x128xf32>
    %24 = vector.broadcast %9 : vector<1x1xf32> to vector<1x128xf32>
    %25 = arith.addf %23, %24 : vector<1x128xf32>
    %cst_11 = arith.constant 5.000000e-01 : f32
    %26 = vector.broadcast %cst_11 : f32 to vector<1x128xf32>
    %27 = arith.mulf %26, %25 : vector<1x128xf32>
    %28 = math.tanh %27 : vector<1x128xf32>
    %cst_12 = arith.constant 5.000000e-01 : f32
    %29 = vector.broadcast %cst_12 : f32 to vector<1x128xf32>
    %30 = arith.mulf %29, %28 : vector<1x128xf32>
    %cst_13 = arith.constant 5.000000e-01 : f32
    %31 = vector.broadcast %cst_13 : f32 to vector<1x128xf32>
    %32 = arith.addf %30, %31 : vector<1x128xf32>
    %c0_14 = arith.constant 0 : index
    %c0_15 = arith.constant 0 : index
    %33 = vector.load %arg5[%c0_14, %c0_15] : memref<1x128xf32, #tpu.memory_space<vmem>>, vector<1x128xf32>
    tpu.vector_store %arg5[%c0_14, %c0_15], %32 {strides = array<i32>} : memref<1x128xf32, #tpu.memory_space<vmem>>, vector<1x128xf32>,
    return
  }
  func.func @transform_0(%arg0: i32) -> (i32, i32) {
    %c0_i32 = arith.constant 0 : i32
    %c0_i32_0 = arith.constant 0 : i32
    return %c0_i32, %arg0 : i32, i32
  }
  func.func @transform_1(%arg0: i32) -> (i32, i32) {
    %c0_i32 = arith.constant 0 : i32
    %c0_i32_0 = arith.constant 0 : i32
    %c0_i32_1 = arith.constant 0 : i32
    return %c0_i32, %c0_i32_0 : i32, i32
  }
  func.func @transform_2(%arg0: i32) -> (i32, i32) {
    %c0_i32 = arith.constant 0 : i32
    %c0_i32_0 = arith.constant 0 : i32
    %c0_i32_1 = arith.constant 0 : i32
    return %c0_i32, %c0_i32_0 : i32, i32
  }
  func.func @transform_3(%arg0: i32) -> (i32, i32) {
    %c0_i32 = arith.constant 0 : i32
    %c0_i32_0 = arith.constant 0 : i32
    %c0_i32_1 = arith.constant 0 : i32
    return %c0_i32, %c0_i32_0 : i32, i32
  }
  func.func @transform_4(%arg0: i32) -> (i32, i32) {
    %c0_i32 = arith.constant 0 : i32
    %c0_i32_0 = arith.constant 0 : i32
    return %c0_i32, %arg0 : i32, i32
  }
}

</mosaic_0001>

<bundles_post_ra>
// kernel: tpu_custom_call.1
= control target key start
LH: loop header
LB: loop body
LE: loop exit
PB: predicated region body
PF: predicated region fallthrough
CT: control target
= control target key end

     0   :  { %9 = vsyncpa [#allocation3], 0  ;;  %s868_s0 = inlined_call_operand.vmem [shape: f32[8,256], index: 0, kind: input, shape index: {}]   ;;  %s869_s1 = inlined_call_operand.hbm [shape: f32[12,9], index: 1, kind: input, shape index: {}]   ;;  %s870_s2 = inlined_call_operand.vmem [shape: f32[8,13], index: 2, kind: input, shape index: {}]   ;;  %s871_s3 = inlined_call_operand.vmem [shape: f32[9,1], index: 3, kind: input, shape index: {}]   ;;  %s872_s4 = inlined_call_operand.hbm [shape: f32[1,256], index: 4, kind: output, shape index: {}]  }
   0x1   :  { %10 = vsyncpa [#allocation4], 0 }
   0x2   :  { %12 = vsyncpa [#allocation4 + $0x1], 0  ;;  %s724_s15 = smov 0   ;;  %s726_s16 = smov 0  }
   0x3   :  { %s728_s17 = smov 0   ;;  %s730_s18 = smov 0  }
   0x4 LB: > { %s745_s19 = sadd.s32 4294967295, %s686_s18   ;;  %s491_s20 = sadd.s32 4294967294, %s686_s18   ;;  %s686_s18 = sphi %s730_s18, %s888_s18   ;;  %s682_s17 = sphi %s728_s17, %s887_s17   ;;  %s678_s16 = sphi %s726_s16, %s886_s16   ;;  %s674_s15 = sphi %s724_s15, %s885_s15  }
   0x5   : > { %s749_s21 = sadd.s32 1, %s686_s18   ;;  %s114_s22 = sadd.s32 1, %s682_s17 }
   0x6   : > { %s111_s23 = ssub.s32 %s686_s18, %s749_s21  ;;  %p124_p0 = scmp.ne.s32.totalorder %s682_s17, %s678_s16 }
   0x7   : > { %p112_p1 = scmp.eq.s32.totalorder %s111_s23, 0  ;;  %p125_p2 = scmp.eq.s32.totalorder %s745_s19, 1 }
   0x8   : > { %p130_p3 = scmp.ne.s32.totalorder %s678_s16, %s674_s15  ;;  %p131_p4 = scmp.eq.s32.totalorder %s491_s20, 1 }
   0x9   : > { %s760_s24 = scalar_select %p112_p1, %s682_s17, %s114_s22  }
   0xa   : > { %p762_p5 = por %p125_p2, %p124_p0  ;;  %p766_p6 = por %p131_p4, %p130_p3 }
   0xb   : > { %p492_p7 = scmp.ge.s32.totalorder %s686_s18, 1  ;;  %p138_p8 = scmp.lt.s32.totalorder %s686_s18, 3 }
   0xc   : > { %s876_s25 = scalar_select %p762_p5, 1, 0 }
   0xd   : > { %s877_s26 = scalar_select %p766_p6, 1, 0 }
   0xe   : > { %p873_p9 = scmp.eq.s32.totalorder %s745_s19, 0  ;;  %p773_p10 = pnand %p492_p7, %p138_p8 }
   0xf   : > { %s688_s28 = smov [#allocation2]   ;;  %s592_s7 = scalar_lea.hbm %s869_s1, 256 }
  0x10   : > { %s878_s27 = scalar_select %p773_p10, 1, 0 }
  0x11   : > { %s150_s29 = sshll.u32 %s688_s28, 4  ;;  %p533_p11 = pneg %p773_p10  ;;  %s151_s29 = int_to_ptr.vmem [resolvable:$true] %s150_s29 }
  0x12   : > { %p593_p13 = scmp.ne.s32.totalorder %s869_s1, %s592_s7  ;;  %p599_p3 = scmp.lt.u32.totalorder %s592_s7, %s869_s1 }
  0x13   : > { %p781_p12 = pnand %p873_p9, %p533_p11 }
  0x15   : > { %p594_p0 = pneg %p781_p12 }
  0x17   : > { %p595_p1 = pnand %p594_p0, %p593_p13 }
  0x19   : > { %p596_p2 = pneg %p595_p1 }
  0x1b   : > { %p601_p4 = pnand %p599_p3, %p596_p2 }
  0x1d   : > { %604 = shalt.err (!%p601_p4)
}
  0x1e   : > { %s605_s12 = scalar_lea.vmem %s151_s29, 256  ;;  %p613_p9 = scmp.lt.s32.totalorder %s151_s29, %s151_s29 }
  0x1f   : > { %p606_p7 = scmp.ne.s32.totalorder %s151_s29, %s605_s12  ;;  %p614_p6 = scmp.lt.s32.totalorder %s605_s12, %s605_s12 }
  0x21   : > { %p608_p8 = pnand %p606_p7, %p594_p0  ;;  %p615_p5 = por %p614_p6, %p613_p9 }
  0x23   : > { %p609_p11 = pneg %p608_p8 }
  0x25   : > { %p616_p10 = pnand %p615_p5, %p609_p11 }
  0x27   : > { %619 = shalt.err (!%p616_p10)
}
  0x28   : > { %s689_s13 = smov 128   ;;  %s690_s14 = smov 8  }
  0x29   : > { %536 = dma.hbm_to_vmem [thread:$0]  (!%p781_p12), %s869_s1, 256, %s151_s29, [#allocation3], %s689_s13, %s689_s13, %s690_s14  }
  0x2a   : > { %p880_p13 = scmp.ne.s32.totalorder %s878_s27, 0 }
  0x2b   : > { %p881_p1 = scmp.eq.s32.totalorder (!%p880_p13), %s745_s19, 0 }
  0x2c   : > { %179 = sbr.rel (%p880_p13) target bundleno = 546 (0x222), region = 36 }
  0x33   : > { %665 = dma.done.wait (%p881_p1), [#allocation3], 256   ;;  %p882_p0 = pmov %p881_p1 }
  0x34   : > { %p203_p5 = scmp.lt.s32.totalorder %s745_s19, 1  ;;  %v691_v0 = vmov 8   ;;  %vm223_vm0 = vcmask 64512   ;;  %v208_v2 = vld [vmem:[#allocation2] sm:$0xff]  ;;  %v209_v3 = vld [vmem:[#allocation2 + $0x8] sm:$0xf] }
  0x35   : > { %667 = vsyncadd (%p882_p0), [#allocation3], 4294967040  ;;  %586 = vset.pattern.permute.xlu0 %v691_v0  ;;  %513 = vmatprep.mubr.msk.f32.mxu0 %vm223_vm0, %v208_v2  ;;  %v692_v4 = vmov 0.0|0.0   ;;  %vm693_vm1 = vmmov 0   ;;  %v694_v5 = vmov 0.0   ;;  %v210_v7 = vld [vmem:[%s870_s2] sm:$0xff] }
  0x36   : > { %s204_s23 = scalar_select %p203_p5, %s745_s19, 1  ;;  %215 = vperm.xlu0 %586, %v208_v2   ;;  %523 = vmatprep.subr.bf16.mxu1 %v692_v4  ;;  %v212_v6 = vld [vmem:[%s871_s3 + $0x8] sm:$0x1]  ;;  %v695_v8 = vmov 12   ;;  %v696_v9 = vmov 0   ;;  %v211_v10 = vld [vmem:[%s871_s3] sm:$0xff] }
  0x37   : > { %520 = vmatprep.mubr.msk.f32.mxu1 %vm693_vm1, %v694_v5  ;;  %587 = vset.pattern.permute.xlu1 %v695_v8  ;;  %vm313_vm2 = vcmask 1043456   ;;  %vm697_vm3 = vmmov 1   ;;  %vm310_vm5 = vcmask 97280   ;;  %s201_s11 = sand.u32 1, %s678_s16   ;;  %s502_s12 = sshll.u32 %s745_s19, 4 }
  0x38   : > { %s497_s28 = sshll.u32 %s204_s23, 3  ;;  %307 = vperm.xlu1 %587, %v210_v7   ;;  %vm525_vm4 = vmpackc.low %vm313_vm2, %vm697_vm3  ;;  %s202_s13 = scalar_lea.vmem [#allocation5], %s201_s11 }
  0x39   : > { %s206_s29 = scalar_lea.vmem %s868_s0, %s497_s28  ;;  %s424_s14 = sshll.u32 %s202_s13, 4  ;;  %s828_s14 = int_to_ptr.vmem [resolvable:$true] %s424_s14 }
  0x3a   : > { %v207_v1 = vld [vmem:[%s206_s29] sm:$0xff]  ;;  %220 = vperm.xlu0 %586, %v209_v3   ;;  %s826_s23 = scalar_lea.hbm %s872_s4, %s502_s12  ;;  %s412_s28 = scalar_lea.sflag [#allocation4], %s201_s11 }
  0x3b   : > { %511 = vmatprep.subr.mxu0 %v207_v1  ;;  %s620_s30 = scalar_lea.vmem %s828_s14, 16  ;;  %p883_p9 = scmp.ne.s32.totalorder %s876_s25, 0 }
  0x3c   : > { %512 = vmatpush3.msra.mxu0 %v207_v1  ;;  %588 = vset.pattern.permute.xlu1 %v696_v9  ;;  %p621_p6 = scmp.ne.s32.totalorder %s828_s14, %s620_s30  ;;  %s698_s19 = smov [#allocation5]  }
  0x3d   : > { %514 = vmatmul.mubr.msk.f32.vlgmr.msra.gmra.mrb[0].mxu0 %vm223_vm0, %v209_v3  ;;  %390 = vperm.xlu1 %588, %v211_v10   ;;  %s624_s5 = sshll.u32 %s698_s19, 4  ;;  %s625_s5 = int_to_ptr.vmem [resolvable:$false] %s624_s5 }
  0x3e   : > { %589 = vset.pattern.permute.xlu0 %v696_v9  ;;  %p622_p10 = pnand %p621_p6, %p883_p9  ;;  %s626_s29 = scalar_lea.vmem %s625_s5, 32 }
  0x3f   : > { %402 = vperm.xlu0 %589, %v212_v6   ;;  %p627_p2 = scmp.lt.s32.totalorder %s828_s14, %s625_s5  ;;  %p628_p3 = scmp.lt.s32.totalorder %s626_s29, %s620_s30 }
  0x40   : > { %p623_p12 = pneg %p622_p10 }
  0x41   : > { %p629_p4 = por %p628_p3, %p627_p2 }
  0x43   : > { %p630_p7 = pnand %p629_p4, %p623_p12 }
  0xb5   : > { %v216_v11 = vpop.permute.xlu0 %215 }
  0xb7   : > { %v308_v20 = vpop.permute.xlu1 %307 }
  0xb9   : > { %v221_v12 = vpop.permute.xlu0 %220 }
  0xbc   : > { %v391_v24 = vpop.permute.xlu1 %390 }
  0xbe   : > { %v403_v32 = vpop.permute.xlu0 %402 }
 0x110   : > { %v515_v13 = vpop.f32.mrb[0].mxu0 }
 0x111   : > { %v300_v14 = vadd.f32 %v515_v13, %v221_v12  ;;  %v294_v15 = vpop.f32.mrb[1].mxu0 }
 0x112   : > { %v295_v16 = vadd.f32 %v294_v15, %v216_v11 }
 0x113   : > { %v304_v17 = vmax.f32 %v300_v14, 0.0 }
 0x114   : > { %v303_v18 = vmax.f32 %v295_v16, 0.0 }
 0x116   : > { %v524_v19 = vpack.c.bf16 %v304_v17, %v303_v18 }
 0x118   : > { %526 = vmatpush3.bf16.msk.msra.mxu1 %vm525_vm4, %v524_v19 }
 0x11b   : > { %521 = vmatmul.mubr.msk.f32.vlgmr.msra.gmra.mrb[0].mxu1 %vm310_vm5, %v210_v7 }
 0x1ee   : > { %v383_v21 = vpop.f32.mrb[0].mxu1 }
 0x1ef   : > { %v384_v22 = vadd.f32 %v383_v21, %v308_v20  ;;  %v522_v23 = vpop.f32.mrb[1].mxu1 }
 0x1f1   : > { %v387_v25 = vmax.f32 %v384_v22, 0.0 }
 0x1f3   : > { %v393_v26 = vmul.f32 %v391_v24, %v387_v25 }
 0x1f5   : > { %v394_v27 = vrot.slane %v393_v26, 4 }
 0x1f7   : > { %v395_v28 = vadd.f32 %v394_v27, %v393_v26 }
 0x1f9   : > { %v396_v29 = vrot.slane %v395_v28, 2 }
 0x1fb   : > { %v397_v30 = vadd.f32 %v396_v29, %v395_v28 }
 0x1fd   : > { %v398_v31 = vrot.slane %v397_v30, 1 }
 0x1ff   : > { %v399_v33 = vadd.f32 %v398_v31, %v397_v30 }
 0x201   : > { %v405_v34 = vadd.f32 %v403_v32, %v399_v33 }
 0x203   : > { %v406_v35 = vmul.f32 0.5, %v405_v34 }
 0x205   : > { %590 = vtanh.f32 %v406_v35 }
 0x20f   : > { %v591_v36 = vpop.eup %590 }
 0x210   : > { %v408_v37 = vmul.f32 0.5, %v591_v36 }
 0x212   : > { %v409_v38 = vadd.f32 0.5, %v408_v37 }
 0x214   : > { %410 = vst [vmem:[%s202_s13] sm:$0x1] %v409_v38 }
 0x215   : > { %633 = shalt.err (!%p630_p7)
}
 0x216   : > { %s634_s27 = scalar_lea.hbm %s826_s23, 16  ;;  %s638_s8 = scalar_lea.hbm %s872_s4, 32 }
 0x217   : > { %p635_p8 = scmp.ne.s32.totalorder %s826_s23, %s634_s27  ;;  %p639_p1 = scmp.lt.u32.totalorder %s826_s23, %s872_s4 }
 0x218   : > { %p640_p0 = scmp.lt.u32.totalorder %s638_s8, %s634_s27  ;;  %p642_p6 = scmp.lt.u32.totalorder %s634_s27, %s826_s23 }
 0x219   : > { %p636_p11 = pnand %p635_p8, %p883_p9 }
 0x21a   : > { %p641_p5 = por %p640_p0, %p639_p1 }
 0x21b   : > { %p637_p13 = pneg %p636_p11 }
 0x21c   : > { %p643_p10 = por %p642_p6, %p641_p5 }
 0x21e   : > { %p644_p12 = pnand %p643_p10, %p637_p13 }
 0x220   : > { %647 = shalt.err (!%p644_p12)
}
 0x221   : > { %531 = dma.vmem_to_hbm [thread:$0]  (%p883_p9), %s828_s14, 16, %s826_s23, %s412_s28  }
 0x222 PF: > { %p543_p2 = scmp.ge.s32.totalorder %s686_s18, 2  ;;  %s436_s11 = sand.u32 1, %s674_s15  }
 0x223   : > { %p884_p3 = scmp.ne.s32.totalorder %s877_s26, 0  ;;  %s437_s12 = scalar_lea.sflag [#allocation4], %s436_s11 }
 0x225   : > { %p538_p4 = pnand %p543_p2, %p884_p3 }
 0x227   : > { %669 = dma.done.wait (!%p538_p4), %s437_s12, 16  }
 0x228   : > { %671 = vsyncadd (!%p538_p4), %s437_s12, 4294967280  ;;  %p15_p7 = scmp.ge.s32.totalorder %s749_s21, 4   ;;  %s885_s15 = smov %s678_s16 }
 0x229   : > { %s886_s16 = smov %s682_s17  ;;  %s887_s17 = smov %s760_s24 }
 0x22a   : > { %s888_s18 = smov %s749_s21  ;;  %17 = sbr.rel (!%p15_p7) target bundleno = 4 (0x4), region = 76 }
 0x231   :  { %441 = vsyncpa [#allocation3], 1 }
 0x232   :  { %443 = vsyncpa [#allocation3 + $0x1], 1 }
 0x233   :  { %444 = vsyncpa [#allocation4], 1 }
 0x234   :  { %446 = vsyncpa [#allocation4 + $0x1], 1 }

</bundles_post_ra>
